<compile_context>
chip_gen: v6e
topology: v6e:2x2x1
jax: 0.10.0
libtpu: 0.0.40
codegen_flags: <defaults>
</compile_context>

<pallas_src>
import jax
import jax.numpy as jnp
from jax.experimental import pallas as pl
from jax.experimental.pallas import tpu as pltpu


def _round_up(n, m):
    return ((n + m - 1) // m) * m


def nnbp_kernel(x_ref, w1_ref, b1_ref, w2_ref, b2_ref, o_ref):
    # fc1 on the MXU; f32 accumulation regardless of the input dtype (f32/bf16).
    h = jnp.dot(x_ref[...], w1_ref[...], preferred_element_type=jnp.float32)  # (TB, H)
    h = jnp.maximum(h + b1_ref[...], 0.0)                                     # bias + ReLU (VPU)
    # fc2 as an MXU contraction that yields z transposed and lane-dense:
    # (1, H) contracted with (TB, H) over H -> (1, TB).
    z = jax.lax.dot_general(
        w2_ref[...], h,
        dimension_numbers=(((1,), (1,)), ((), ())),
        preferred_element_type=jnp.float32)                                   # (1, TB)
    z = z + b2_ref[0, 0]                                                      # scalar bias from SMEM
    # Exact sigmoid; exp and reciprocal both issue on the EUP slot.
    o_ref[...] = pl.reciprocal(1.0 + jnp.exp(-z), approx=False).astype(o_ref.dtype)


def nnbp_forward(x, w1, b1, w2, b2, *, block_batch=4096):
    """Pallas forward pass of NNBPClassifier.

    x:  (B, input_dim)       float32 or bfloat16 (bf16 only if the producer already emits it)
    w1: (input_dim, hidden)  (PyTorch fc1.weight.T)
    b1: (hidden,) or (1, hidden)
    w2: (hidden, 1) / (1, hidden) / (hidden,)  (PyTorch fc2.weight)
    b2: scalar / (1, 1)
    returns (B, 1) float32 in (0, 1)
    """
    B, in_dim = x.shape
    hidden = w1.shape[1]

    # One-time (tiny) parameter reshapes.  x itself is NEVER padded, copied or
    # cast here: that would add extra full HBM passes over the dominant input.
    w1 = jnp.asarray(w1, jnp.float32)
    b1 = jnp.reshape(jnp.asarray(b1, jnp.float32), (1, hidden))
    w2_row = jnp.reshape(jnp.asarray(w2, jnp.float32), (1, hidden))
    b2 = jnp.reshape(jnp.asarray(b2, jnp.float32), (1, 1))

    # Pad hidden to a lane-aligned multiple of 128 (zero padding is exact).
    H = _round_up(hidden, 128)
    if H != hidden:
        w1 = jnp.pad(w1, ((0, 0), (0, H - hidden)))
        b1 = jnp.pad(b1, ((0, 0), (0, H - hidden)))
        w2_row = jnp.pad(w2_row, ((0, 0), (0, H - hidden)))

    # Narrow fc1 weights only if x already arrives narrow (works on v5e too;
    # accumulation stays f32 inside the kernel).  bias/ReLU/sigmoid stay f32.
    if x.dtype == jnp.bfloat16:
        w1 = w1.astype(jnp.bfloat16)

    # Batch tiling: pick the tile count first so awkward B doesn't waste ~20%
    # of DMA/compute on padded rows, then round the tile to the lane multiple
    # required by the (1, TB) output block.  The final block may be partial.
    if B <= block_batch:
        grid = 1
        TB = B                                   # block == full array, no (8,128) constraint
    else:
        grid = pl.cdiv(B, block_batch)
        TB = _round_up(pl.cdiv(B, grid), 128)    # lane dim of the (1, TB) output block
        grid = pl.cdiv(B, TB)
        if grid == 1:
            TB = B

    cost = pl.CostEstimate(
        flops=int(2 * B * in_dim * H + 2 * B * H + 3 * B * H),
        transcendentals=int(2 * B),
        bytes_accessed=int(
            x.size * x.dtype.itemsize
            + w1.size * w1.dtype.itemsize
            + (b1.size + w2_row.size + b2.size + B) * 4
        ),
    )

    out = pl.pallas_call(
        nnbp_kernel,
        grid=(grid,),
        in_specs=[
            pl.BlockSpec((TB, in_dim), lambda i: (i, 0)),         # x: streamed per tile
            pl.BlockSpec((in_dim, H), lambda i: (0, 0)),          # w1: resident in VMEM
            pl.BlockSpec((1, H), lambda i: (0, 0)),               # b1: resident
            pl.BlockSpec((1, H), lambda i: (0, 0)),               # w2 row: resident
            pl.BlockSpec(memory_space=pltpu.MemorySpace.SMEM),    # b2: scalar in SMEM
        ],
        out_specs=pl.BlockSpec((1, TB), lambda i: (0, i)),        # lane-dense z^T tile
        out_shape=jax.ShapeDtypeStruct((1, B), jnp.float32),
        compiler_params=pltpu.CompilerParams(
            # TODO(synk): on v7x, profile whether the batch axis actually shards
            # across both TensorCores; if not, switch to an explicit core axis.
            dimension_semantics=("parallel",),
        ),
        cost_estimate=cost,
    )(x, w1, b1, w2_row, b2)

    # (1, B) -> (B, 1): identical flat order, free reshape.
    return out.reshape(B, 1)


def init_params(key, input_dim, hidden_dim):
    # Deterministic init mimicking PyTorch nn.Linear default:
    # U(-1/sqrt(fan_in), 1/sqrt(fan_in)) for weight and bias.
    k1, k2, k3, k4 = jax.random.split(key, 4)
    bound1 = 1.0 / jnp.sqrt(jnp.float32(input_dim))
    bound2 = 1.0 / jnp.sqrt(jnp.float32(hidden_dim))
    w1 = jax.random.uniform(k1, (input_dim, hidden_dim), jnp.float32, -bound1, bound1)
    b1 = jax.random.uniform(k2, (1, hidden_dim), jnp.float32, -bound1, bound1)
    w2 = jax.random.uniform(k3, (hidden_dim, 1), jnp.float32, -bound2, bound2)
    b2 = jax.random.uniform(k4, (1, 1), jnp.float32, -bound2, bound2)
    return w1, b1, w2, b2


def _reference(x, w1, b1, w2, b2):
    h = jnp.maximum(jnp.dot(x.astype(jnp.float32), w1.astype(jnp.float32)) + b1, 0.0)
    return jax.nn.sigmoid(jnp.dot(h, jnp.asarray(w2, jnp.float32).reshape(-1, 1)) + b2)


if __name__ == "__main__":
    input_dim = 32
    hidden_dim = 64  # matches the PyTorch spec

    key = jax.random.PRNGKey(0)
    kx, kp = jax.random.split(key)
    w1, b1, w2, b2 = init_params(kp, input_dim, hidden_dim)

    # --- small batch, single tile, exact f32 path ---
    x_small = jax.random.normal(kx, (8, input_dim), jnp.float32)
    out_small = jax.block_until_ready(nnbp_forward(x_small, w1, b1, w2, b2))
    ref_small = _reference(x_small, w1, b1, w2, b2)
    assert out_small.shape == (8, 1)
    assert jnp.allclose(out_small, ref_small, atol=1e-5), float(
        jnp.max(jnp.abs(out_small - ref_small)))

    # --- non-multiple batch: multi-tile grid with a partial (masked) final block ---
    x_big = jax.random.normal(jax.random.fold_in(kx, 1), (300, input_dim), jnp.float32)
    out_big = jax.block_until_ready(nnbp_forward(x_big, w1, b1, w2, b2, block_batch=128))
    ref_big = _reference(x_big, w1, b1, w2, b2)
    assert out_big.shape == (300, 1)
    assert jnp.allclose(out_big, ref_big, atol=1e-5), float(
        jnp.max(jnp.abs(out_big - ref_big)))

    # --- bf16-producer path: x already bf16, w1 is narrowed to match in-wrapper ---
    x_bf = x_big.astype(jnp.bfloat16)
    out_bf = jax.block_until_ready(nnbp_forward(x_bf, w1, b1, w2, b2, block_batch=128))
    ref_bf = _reference(x_bf, w1.astype(jnp.bfloat16), b1, w2, b2)
    assert out_bf.shape == (300, 1)
    assert jnp.allclose(out_bf, ref_bf, atol=5e-3), float(
        jnp.max(jnp.abs(out_bf - ref_bf)))

    print("KERNEL_OK")
</pallas_src>

<mosaic_0001>
module attributes {stable_mosaic.version = 11 : i64} {
  func.func @nnbp_kernel(%arg0: i32, %arg1: memref<8x32xf32, #tpu.memory_space<vmem>>, %arg2: memref<32x128xf32, #tpu.memory_space<vmem>>, %arg3: memref<1x128xf32, #tpu.memory_space<vmem>>, %arg4: memref<1x128xf32, #tpu.memory_space<vmem>>, %arg5: memref<1x1xf32, #tpu.memory_space<smem>>, %arg6: memref<1x8xf32, #tpu.memory_space<vmem>>) attributes {dimension_semantics = [#tpu.dimension_semantics<parallel>], iteration_bounds = array<i64: 1>, scalar_prefetch = 0 : i64, scratch_operands = 0 : i64, tpu.core_type = #tpu.core_type<tc>, window_params = [{transform_indices = @transform_0, window_bounds = array<i64: 8, 32>}, {pipeline_mode = #tpu.pipeline_mode<synchronous>, transform_indices = @transform_1, window_bounds = array<i64: 32, 128>}, {pipeline_mode = #tpu.pipeline_mode<synchronous>, transform_indices = @transform_2, window_bounds = array<i64: 1, 128>}, {pipeline_mode = #tpu.pipeline_mode<synchronous>, transform_indices = @transform_3, window_bounds = array<i64: 1, 128>}, {transform_indices = @transform_4, window_bounds = array<i64: 1, 1>}, {transform_indices = @transform_5, window_bounds = array<i64: 1, 8>}]} {
    %c0 = arith.constant 0 : index
    %c0_0 = arith.constant 0 : index
    %0 = vector.load %arg1[%c0, %c0_0] : memref<8x32xf32, #tpu.memory_space<vmem>>, vector<8x32xf32>
    %c0_1 = arith.constant 0 : index
    %c0_2 = arith.constant 0 : index
    %1 = vector.load %arg2[%c0_1, %c0_2] : memref<32x128xf32, #tpu.memory_space<vmem>>, vector<32x128xf32>
    %cst = arith.constant dense<0.000000e+00> : vector<8x128xf32>
    %2 = tpu.matmul %0, %1, %cst {dimension_numbers = #tpu.dot_dimension_numbers<[1], [0], [0], [1], [0, 0, 1, 1], [], []>} : vector<8x32xf32>, vector<32x128xf32>, vector<8x128xf32> -> vector<8x128xf32>
    %c0_3 = arith.constant 0 : index
    %c0_4 = arith.constant 0 : index
    %3 = vector.load %arg3[%c0_3, %c0_4] : memref<1x128xf32, #tpu.memory_space<vmem>>, vector<1x128xf32>
    %4 = vector.broadcast %3 : vector<1x128xf32> to vector<8x128xf32>
    %5 = arith.addf %2, %4 : vector<8x128xf32>
    %cst_5 = arith.constant 0.000000e+00 : f32
    %6 = vector.broadcast %cst_5 : f32 to vector<8x128xf32>
    %7 = arith.maximumf %5, %6 : vector<8x128xf32>
    %c0_6 = arith.constant 0 : index
    %c0_7 = arith.constant 0 : index
    %8 = vector.load %arg4[%c0_6, %c0_7] : memref<1x128xf32, #tpu.memory_space<vmem>>, vector<1x128xf32>
    %cst_8 = arith.constant dense<0.000000e+00> : vector<1x8xf32>
    %9 = tpu.matmul %8, %7, %cst_8 {dimension_numbers = #tpu.dot_dimension_numbers<[1], [1], [0], [0], [0, 0, 1, 0], [], []>} : vector<1x128xf32>, vector<8x128xf32>, vector<1x8xf32> -> vector<1x8xf32>
    %c0_9 = arith.constant 0 : index
    %c0_10 = arith.constant 0 : index
    %10 = memref.load %arg5[%c0_9, %c0_10] : memref<1x1xf32, #tpu.memory_space<smem>>
    %11 = vector.broadcast %10 : f32 to vector<1x8xf32>
    %12 = arith.addf %9, %11 : vector<1x8xf32>
    %cst_11 = arith.constant 0.000000e+00 : f32
    %13 = vector.broadcast %cst_11 : f32 to vector<1x8xf32>
    %14 = arith.subf %13, %12 : vector<1x8xf32>
    %15 = math.exp %14 : vector<1x8xf32>
    %cst_12 = arith.constant 1.000000e+00 : f32
    %16 = vector.broadcast %cst_12 : f32 to vector<1x8xf32>
    %17 = arith.addf %16, %15 : vector<1x8xf32>
    %18 = tpu.reciprocal %17 : vector<1x8xf32> -> vector<1x8xf32>
    %c0_13 = arith.constant 0 : index
    %c0_14 = arith.constant 0 : index
    %19 = vector.load %arg6[%c0_13, %c0_14] : memref<1x8xf32, #tpu.memory_space<vmem>>, vector<1x8xf32>
    tpu.vector_store %arg6[%c0_13, %c0_14], %18 {strides = array<i32>} : memref<1x8xf32, #tpu.memory_space<vmem>>, vector<1x8xf32>,
    return
  }
  func.func @transform_0(%arg0: i32) -> (i32, i32) {
    %c0_i32 = arith.constant 0 : i32
    %c0_i32_0 = arith.constant 0 : i32
    return %arg0, %c0_i32 : i32, i32
  }
  func.func @transform_1(%arg0: i32) -> (i32, i32) {
    %c0_i32 = arith.constant 0 : i32
    %c0_i32_0 = arith.constant 0 : i32
    %c0_i32_1 = arith.constant 0 : i32
    return %c0_i32, %c0_i32_0 : i32, i32
  }
  func.func @transform_2(%arg0: i32) -> (i32, i32) {
    %c0_i32 = arith.constant 0 : i32
    %c0_i32_0 = arith.constant 0 : i32
    %c0_i32_1 = arith.constant 0 : i32
    return %c0_i32, %c0_i32_0 : i32, i32
  }
  func.func @transform_3(%arg0: i32) -> (i32, i32) {
    %c0_i32 = arith.constant 0 : i32
    %c0_i32_0 = arith.constant 0 : i32
    %c0_i32_1 = arith.constant 0 : i32
    return %c0_i32, %c0_i32_0 : i32, i32
  }
  func.func @transform_4(%arg0: i32) -> (i32, i32) {
    %c0_i32 = arith.constant 0 : i32
    %c0_i32_0 = arith.constant 0 : i32
    %c0_i32_1 = arith.constant 0 : i32
    return %c0_i32, %c0_i32_0 : i32, i32
  }
  func.func @transform_5(%arg0: i32) -> (i32, i32) {
    %c0_i32 = arith.constant 0 : i32
    %c0_i32_0 = arith.constant 0 : i32
    return %c0_i32, %arg0 : i32, i32
  }
}

</mosaic_0001>

<bundles_post_ra>
// kernel: tpu_custom_call.1
= control target key start
LH: loop header
LB: loop body
LE: loop exit
PB: predicated region body
PF: predicated region fallthrough
CT: control target
= control target key end

     0   :  { %11 = vsyncpa [#allocation4], 0  ;;  %s388_s0 = inlined_call_operand.hbm [shape: f32[8,32], index: 0, kind: input, shape index: {}]   ;;  %s389_s1 = inlined_call_operand.hbm [shape: f32[32,128], index: 1, kind: input, shape index: {}]   ;;  %s390_s2 = inlined_call_operand.vmem [shape: f32[1,128], index: 2, kind: input, shape index: {}]   ;;  %s391_s3 = inlined_call_operand.vmem [shape: f32[1,128], index: 3, kind: input, shape index: {}]   ;;  %s392_s4 = inlined_call_operand.<no memory space> [shape: f32[1,1], index: 4, kind: input, shape index: {}]   ;;  %s393_s5 = inlined_call_operand.hbm [shape: f32[1,8], index: 5, kind: output, shape index: {}]  }
   0x1   :  { %12 = vsyncpa [#allocation7], 0 }
   0x2   :  { %13 = vsyncpa [#allocation5], 0  ;;  %s333_s18 = smov [#allocation3]   ;;  %s334_s20 = smov [#allocation6]  }
   0x3   :  { %s20_s19 = sshll.u32 %s333_s18, 4  ;;  %s29_s21 = sshll.u32 %s334_s20, 4  ;;  %s21_s19 = int_to_ptr.vmem [resolvable:$true] %s20_s19  ;;  %s30_s21 = int_to_ptr.vmem [resolvable:$true] %s29_s21 }
   0x4   :  { %s275_s22 = scalar_lea.vmem %s21_s19, 128  ;;  %p280_p1 = scmp.lt.s32.totalorder %s21_s19, %s21_s19 }
   0x5   :  { %p276_p0 = scmp.ne.s32.totalorder %s21_s19, %s275_s22  ;;  %p281_p2 = scmp.lt.s32.totalorder %s275_s22, %s275_s22 }
   0x7   :  { %p282_p3 = por %p281_p2, %p280_p1 }
   0x9   :  { %p283_p4 = pnand %p282_p3, %p276_p0 }
   0xb   :  { %286 = shalt.err (!%p283_p4)
}
   0xc   :  { %23 = dma.hbm_to_vmem [thread:$0]  %s388_s0, 128, %s21_s19, [#allocation4]  }
   0xd   :  { %s295_s25 = scalar_lea.vmem %s30_s21, 512  ;;  %p300_p6 = scmp.lt.s32.totalorder %s30_s21, %s30_s21 }
   0xe   :  { %p296_p5 = scmp.ne.s32.totalorder %s30_s21, %s295_s25  ;;  %p301_p7 = scmp.lt.s32.totalorder %s295_s25, %s295_s25 }
  0x10   :  { %p302_p8 = por %p301_p7, %p300_p6 }
  0x12   :  { %p303_p9 = pnand %p302_p8, %p296_p5 }
  0x14   :  { %306 = shalt.err (!%p303_p9)
}
  0x15   :  { %s335_s26 = smov 128   ;;  %s336_s27 = smov 8  }
  0x16   :  { %35 = dma.hbm_to_vmem [thread:$0]  %s389_s1, 512, %s30_s21, [#allocation7], %s335_s26, %s335_s26, %s336_s27  }
  0x17   :  { %327 = dma.done.wait [#allocation4], 128  }
  0x18   :  { %328 = vsyncadd [#allocation4], 4294967168 }
  0x19   :  { %329 = dma.done.wait [#allocation7], 512  }
  0x1a   :  { %330 = vsyncadd [#allocation7], 4294966784  ;;  %v337_v0 = vmov 0.0   ;;  %vm338_vm0 = vmmov 0   ;;  %v52_v1 = vld [vmem:[#allocation6 + $0x18] sm:$0xff]  ;;  %v51_v2 = vld [vmem:[#allocation6 + $0x10] sm:$0xff]  ;;  %v137_v12 = vstv %s392_s4 }
  0x1b   :  { %240 = vmatprep.subr.mxu0 %v337_v0  ;;  %248 = vmatprep.mubr.msk.f32.mxu0 %vm338_vm0, %v337_v0  ;;  %v50_v3 = vld [vmem:[#allocation6 + $0x8] sm:$0xff]  ;;  %v49_v4 = vld [vmem:[#allocation6] sm:$0xff]  ;;  %v48_v5 = vld [vmem:[#allocation3] sm:$0xff]  ;;  %vm60_vm1 = vcmask 261120   ;;  %vm213_vm2 = vcmask 57344  }
  0x1c   :  { %251 = vmatprep.subr.mxu1 %v337_v0  ;;  %253 = vmatprep.mubr.msk.f32.mxu1 %vm338_vm0, %v337_v0  ;;  %v231_v6 = vld [vmem:[%s390_s2] ss:$0 sm:$0xff]  ;;  %s339_s2 = smov [#allocation8]  }
  0x1d   :  { %241 = vmatpush3.msra.mxu0 %v52_v1  ;;  %v135_v11 = vld [vmem:[%s391_s3] sm:$0x1]  ;;  %s221_s9 = sshll.u32 %s339_s2, 4  ;;  %s222_s9 = int_to_ptr.vmem [resolvable:$true] %s221_s9 }
  0x1e   :  { %242 = vmatprep.subr.mxu0 %v337_v0  ;;  %s307_s3 = scalar_lea.vmem %s222_s9, 16  ;;  %s311_s10 = scalar_lea.vmem %s222_s9, 32 }
  0x1f   :  { %243 = vmatpush3.msra.mxu0 %v51_v2  ;;  %p308_p10 = scmp.ne.s32.totalorder %s222_s9, %s307_s3  ;;  %p312_p11 = scmp.lt.s32.totalorder %s222_s9, %s222_s9 }
  0x20   :  { %244 = vmatprep.subr.mxu0 %v337_v0  ;;  %p313_p12 = scmp.lt.s32.totalorder %s311_s10, %s307_s3 }
  0x21   :  { %245 = vmatpush3.msra.mxu0 %v50_v3 }
  0x22   :  { %246 = vmatprep.subr.mxu0 %v337_v0  ;;  %p314_p13 = por %p313_p12, %p312_p11 }
  0x23   :  { %247 = vmatpush3.msra.mxu0 %v49_v4 }
  0x24   :  { %249 = vmatmul.mubr.msk.f32.vlgmr.msra.gmra.mxu0 %vm60_vm1, %v48_v5  ;;  %p315_p0 = pnand %p314_p13, %p308_p10 }
  0xe4   :  { %v130_v7 = vpop.f32.mrf.mxu0 }
  0xe5   :  { %v131_v8 = vadd.f32 %v231_v6, %v130_v7 }
  0xe6   :  { %v250_v9 = vpop.f32.mrf.mxu0 }
  0xe7   :  { %v134_v10 = vmax.f32 %v131_v8, 0.0 }
  0xe9   :  { %252 = vmatpush3.xpose.msra.mxu1 %v134_v10 }
  0xec   :  { %254 = vmatmul.mubr.f32.vlgmr.msra.gmra.mxu1 %v135_v11 }
 0x1ac   :  { %v204_v13 = vpop.f32.mrf.mxu1 }
 0x1ad   :  { %v205_v14 = vadd.f32 %v204_v13, %v137_v12 }
 0x1ae   :  { %v255_v15 = vpop.f32.mrf.mxu1 }
 0x1af   :  { %v208_v16 = vsub.f32 0.0, %v205_v14 }
 0x1b1   :  { %v209_v17 = vmul.f32 1.442695, %v208_v16 }
 0x1b3   :  { %263 = vpow2.f32 %v209_v17 }
 0x1c0   :  { %v264_v18 = vpop.eup %263 }
 0x1c1   :  { %v211_v19 = vadd.f32 1.0, %v264_v18 }
 0x1c3   :  { %265 = vrcp.f32 %v211_v19 }
 0x1d0   :  { %v266_v20 = vpop.eup %265 }
 0x1d1   :  { %214 = vst.msk [vmem:[#allocation8] sm:$0x1] %vm213_vm2, %v266_v20 }
 0x1d2   :  { %318 = shalt.err (!%p315_p0)
}
 0x1d3   :  { %224 = dma.vmem_to_hbm [thread:$0]  %s222_s9, 16, %s393_s5, [#allocation5]  }
 0x1d4   :  { %331 = dma.done.wait [#allocation5], 16  }
 0x1d5   :  { %332 = vsyncadd [#allocation5], 4294967280 }
 0x1d6   :  { %228 = vsyncpa [#allocation4], 1 }
 0x1d7   :  { %229 = vsyncpa [#allocation7], 1 }
 0x1d8   :  { %230 = vsyncpa [#allocation5], 1 }

</bundles_post_ra>
